<compile_context>
chip_gen: v7x
topology: tpu7x:2x2x1
jax: 0.10.0
libtpu: 0.0.40
codegen_flags: <defaults>
</compile_context>

<pallas_src>
import functools

import jax
import jax.numpy as jnp
from jax.experimental import pallas as pl
from jax.experimental.pallas import tpu as pltpu

LANE = 128     # weight feature dims padded to multiples of the 128-lane vreg width
SUBLANE = 8    # row-axis tile quantum


def _round_up(v, m):
    return (v + m - 1) // m * m


def _vmem_capacity_bytes():
    """Per-core VMEM capacity; falls back to the smallest (v7x, 64 MiB) if the query fails."""
    try:
        info = pltpu.get_tpu_info()
        cap = getattr(info, "vmem_capacity_bytes", None)
        if cap:
            return int(cap)
    except Exception:
        pass
    return 64 << 20


def _plan_tiles(M, in_dim, h_pad, out_pad, n_mid_alloc):
    """Pick the row-tile size and a VMEM limit that actually covers the kernel's needs."""
    cap = _vmem_capacity_bytes()
    budget = min(int(cap * 3 // 4), 96 << 20)          # ~48 MiB on v7x, ~96 MiB on v5e/v6e
    row_cap = 512 if cap <= (64 << 20) else 1024       # v7x keeps smaller row tiles

    # Resident per-head parameter bytes; Pallas double-buffers every input by default,
    # so the x2 factor is included (the previous version under-counted this).
    weight_bytes = 2 * (in_dim * h_pad * 2                        # w_in  (bf16)
                        + n_mid_alloc * h_pad * h_pad * 2         # w_mid (bf16)
                        + h_pad * out_pad * 2                     # w_out (bf16)
                        + (h_pad + n_mid_alloc * h_pad + out_pad) * 4)   # biases (f32)

    if M <= SUBLANE:
        tile_m = M                                     # block == full row extent (no row padding)
    else:
        tile_m = min(row_cap, (M // SUBLANE) * SUBLANE)  # partial boundary block covers the tail

    def need(tm):
        io = 2 * tm * in_dim * 2 + 2 * tm * out_pad * 4   # x (bf16) + out (f32), double-buffered
        act = 2 * tm * h_pad * 4                          # live activation / spill headroom
        return weight_bytes + io + act

    while tile_m > SUBLANE and need(tile_m) > budget:
        tile_m = max(SUBLANE, _round_up(tile_m // 2, SUBLANE))

    vmem_limit = int(min(max(need(tile_m) + (4 << 20), 32 << 20), budget))
    if vmem_limit < need(tile_m):                      # pathological: params alone exceed soft budget
        vmem_limit = int(min(need(tile_m) + (4 << 20), cap))
    return tile_m, vmem_limit


def _mlp_bank_kernel(x_ref, w_in_ref, b_in_ref, w_mid_ref, b_mid_ref,
                     w_out_ref, b_out_ref, o_ref, *, n_mid, sigmoid_output):
    """One head x one row tile: h = relu(x@W0+b0) -> [relu(h@Wi+bi)]* -> h@Wf+bf (opt. sigmoid)."""
    # First layer: bf16 operands on the MXU, f32 accumulation.
    y = jnp.dot(x_ref[...], w_in_ref[...], preferred_element_type=jnp.float32)
    h = jnp.maximum(y + b_in_ref[...], 0.0).astype(jnp.bfloat16)      # bf16 activation carry
    for i in range(n_mid):                                            # static, small (num_layers - 2)
        y = jnp.dot(h, w_mid_ref[i], preferred_element_type=jnp.float32)
        h = jnp.maximum(y + b_mid_ref[i], 0.0).astype(jnp.bfloat16)
    y = jnp.dot(h, w_out_ref[...], preferred_element_type=jnp.float32) + b_out_ref[...]
    if sigmoid_output:
        y = jax.nn.sigmoid(y)                                         # EUP path, f32
    o_ref[...] = y.astype(o_ref.dtype)                                # single lane-dense store


def fused_mlp_heads(x, w_in, b_in, w_mid, b_mid, w_out, b_out, *, n_mid, sigmoid_output):
    """Run H independent MLP heads in one pallas_call.

    x:     (H, M, in_dim)                  bf16 activations (unpadded rows/lanes)
    w_in:  (H, in_dim, h_pad)        bf16  b_in:  (H, 1, h_pad)              f32
    w_mid: (H, n_mid_alloc, h_pad, h_pad)  bf16  b_mid: (H, n_mid_alloc, 1, h_pad)  f32
    w_out: (H, h_pad, out_pad)       bf16  b_out: (H, 1, out_pad)            f32
    returns (H, M, out_pad) f32; the caller lane-slices each head's logical out_dim.
    """
    H, M, in_dim = x.shape
    h_pad = w_in.shape[-1]
    out_pad = w_out.shape[-1]
    n_mid_alloc = w_mid.shape[1]

    tile_m, vmem_limit = _plan_tiles(M, in_dim, h_pad, out_pad, n_mid_alloc)
    grid = (H, pl.cdiv(M, tile_m))      # head axis first: weights refetched only when the head changes

    kernel = functools.partial(_mlp_bank_kernel, n_mid=n_mid, sigmoid_output=sigmoid_output)

    return pl.pallas_call(
        kernel,
        out_shape=jax.ShapeDtypeStruct((H, M, out_pad), jnp.float32),
        grid=grid,
        in_specs=[
            pl.BlockSpec((None, tile_m, in_dim), lambda h, i: (h, i, 0)),                 # x row tiles
            pl.BlockSpec((None, in_dim, h_pad), lambda h, i: (h, 0, 0)),                  # per-head params:
            pl.BlockSpec((None, 1, h_pad), lambda h, i: (h, 0, 0)),                       #   constant over the
            pl.BlockSpec((None, n_mid_alloc, h_pad, h_pad), lambda h, i: (h, 0, 0, 0)),   #   row axis, change
            pl.BlockSpec((None, n_mid_alloc, 1, h_pad), lambda h, i: (h, 0, 0, 0)),       #   only with h
            pl.BlockSpec((None, h_pad, out_pad), lambda h, i: (h, 0, 0)),
            pl.BlockSpec((None, 1, out_pad), lambda h, i: (h, 0, 0)),
        ],
        out_specs=pl.BlockSpec((None, tile_m, out_pad), lambda h, i: (h, i, 0)),
        compiler_params=pltpu.CompilerParams(
            dimension_semantics=("parallel", "parallel"),   # heads x row tiles shard across v7x's 2 TCs
            vmem_limit_bytes=vmem_limit,
        ),
    )(x, w_in, b_in, w_mid, b_mid, w_out, b_out)


class MLPHeadBank:
    """Bank of H MLP heads sharing (input_dim, hidden_dim, num_layers); per-head out_dim allowed."""

    def __init__(self, input_dim, hidden_dim, out_dims, num_layers, sigmoid_output=False, key=None):
        # num_layers >= 2: layer0 in->hidden (ReLU), (num_layers-2) hidden->hidden (ReLU), final no-ReLU.
        assert num_layers >= 2, "MLPHeadBank supports num_layers >= 2 (MaskDecoderMine uses 3)"
        self.H = len(out_dims)
        self.input_dim = input_dim
        self.hidden_dim = hidden_dim
        self.out_dims = list(out_dims)
        self.num_layers = num_layers
        self.sigmoid_output = sigmoid_output
        self.n_mid = num_layers - 2
        n_mid_alloc = max(self.n_mid, 1)               # keep a (skipped) dummy slot when num_layers == 2
        h_pad = _round_up(hidden_dim, LANE)
        out_pad = _round_up(max(self.out_dims), LANE)
        self.h_pad, self.out_pad, self.n_mid_alloc = h_pad, out_pad, n_mid_alloc

        key = jax.random.PRNGKey(0) if key is None else key
        w_in = jnp.zeros((self.H, input_dim, h_pad), jnp.float32)
        b_in = jnp.zeros((self.H, 1, h_pad), jnp.float32)
        w_mid = jnp.zeros((self.H, n_mid_alloc, h_pad, h_pad), jnp.float32)
        b_mid = jnp.zeros((self.H, n_mid_alloc, 1, h_pad), jnp.float32)
        w_out = jnp.zeros((self.H, h_pad, out_pad), jnp.float32)
        b_out = jnp.zeros((self.H, 1, out_pad), jnp.float32)
        self.ref_params = []   # per head: list of (bf16 weight (n,k), f32 bias (1,k))
        for hidx, od in enumerate(self.out_dims):
            dims = ([(input_dim, hidden_dim)]
                    + [(hidden_dim, hidden_dim)] * self.n_mid
                    + [(hidden_dim, od)])
            layers = []
            for li, (n, k) in enumerate(dims):
                key, kw, kb = jax.random.split(key, 3)
                bound = 1.0 / float(n) ** 0.5          # nn.Linear-style uniform init scale
                w = jax.random.uniform(kw, (n, k), jnp.float32, -bound, bound)
                b = jax.random.uniform(kb, (1, k), jnp.float32, -bound, bound)
                if li == 0:
                    w_in = w_in.at[hidx, :, :k].set(w)
                    b_in = b_in.at[hidx, :, :k].set(b)
                elif li == len(dims) - 1:
                    w_out = w_out.at[hidx, :n, :k].set(w)
                    b_out = b_out.at[hidx, :, :k].set(b)
                else:
                    w_mid = w_mid.at[hidx, li - 1, :n, :k].set(w)
                    b_mid = b_mid.at[hidx, li - 1, :, :k].set(b)
                layers.append((w.astype(jnp.bfloat16), b))
            self.ref_params.append(layers)
        self.w_in = w_in.astype(jnp.bfloat16)
        self.b_in = b_in
        self.w_mid = w_mid.astype(jnp.bfloat16)
        self.b_mid = b_mid
        self.w_out = w_out.astype(jnp.bfloat16)
        self.b_out = b_out

    def __call__(self, x):
        """x: (H, M, input_dim) -> (H, M, out_pad) f32 (padded lanes; see .heads())."""
        assert x.shape[0] == self.H and x.shape[-1] == self.input_dim
        return fused_mlp_heads(x.astype(jnp.bfloat16),
                               self.w_in, self.b_in, self.w_mid, self.b_mid,
                               self.w_out, self.b_out,
                               n_mid=self.n_mid, sigmoid_output=self.sigmoid_output)

    def heads(self, x):
        """Returns a list of H arrays, head h with shape (M, out_dims[h])."""
        out = self(x)
        return [out[h, :, :od] for h, od in enumerate(self.out_dims)]

    def reference(self, x):
        """Pure-JAX forward with identical numerics (bf16 operands, f32 accumulation)."""
        outs = []
        for hidx, layers in enumerate(self.ref_params):
            h = x[hidx].astype(jnp.bfloat16)
            for li, (w, b) in enumerate(layers):
                y = jnp.dot(h, w, preferred_element_type=jnp.float32) + b
                if li < len(layers) - 1:
                    h = jnp.maximum(y, 0.0).astype(jnp.bfloat16)
                else:
                    if self.sigmoid_output:
                        y = jax.nn.sigmoid(y)
                    outs.append(y)
        return outs


class MLP:
    """JAX/Pallas port of the PyTorch MLP (Linear+ReLU chain, optional sigmoid), single head."""

    def __init__(self, input_dim, hidden_dim, output_dim, num_layers, sigmoid_output=False, key=None):
        self.bank = MLPHeadBank(input_dim, hidden_dim, [output_dim], num_layers,
                                sigmoid_output=sigmoid_output, key=key)
        self.output_dim = output_dim

    def __call__(self, x):
        lead = x.shape[:-1]
        x2 = x.reshape((-1, x.shape[-1]))[None]            # (1, M, in_dim)
        out = self.bank(x2)[0, :, :self.output_dim]
        return out.reshape(lead + (self.output_dim,))

    def reference(self, x):
        lead = x.shape[:-1]
        x2 = x.reshape((-1, x.shape[-1]))[None]
        out = self.bank.reference(x2)[0]
        return out.reshape(lead + (self.output_dim,))


if __name__ == "__main__":
    key = jax.random.PRNGKey(0)

    # MaskDecoderMine-style head configuration at SMALL shapes:
    #   transformer_dim=32, num_multimask_outputs=3 -> 4 mask tokens + 1 hf token = 5
    #   hypernetwork-style heads (out_dim = transformer_dim // 8), plus the IoU head
    #   (out_dim = 4) => 6 heads fused into ONE pallas_call.
    transformer_dim = 32
    batch = 2
    num_mask_tokens = 4                                   # num_multimask_outputs + 1 (pre-hf increment)
    out_dims = [transformer_dim // 8] * (num_mask_tokens + 1) + [num_mask_tokens]

    key, kparams, ktok = jax.random.split(key, 3)
    bank = MLPHeadBank(transformer_dim, transformer_dim, out_dims, num_layers=3,
                       sigmoid_output=False, key=kparams)

    # Fake transformer token outputs hs: (B, tokens, D); token 0 = iou token,
    # tokens 1..5 = mask tokens (incl. hf token), remaining = prompt tokens.
    hs = jax.random.normal(ktok, (batch, 2 + num_mask_tokens + 2, transformer_dim), jnp.float32)
    mask_tokens_out = hs[:, 1:2 + num_mask_tokens, :]     # (B, 5, D)
    iou_token_out = hs[:, 0, :]                           # (B, D)
    # Stack the per-head inputs on a head axis: (H=6, B, D).
    x_heads = jnp.concatenate([jnp.swapaxes(mask_tokens_out, 0, 1), iou_token_out[None]], axis=0)

    outs = [jax.block_until_ready(o) for o in bank.heads(x_heads)]
    refs = bank.reference(x_heads)
    for o, r in zip(outs, refs):
        assert o.shape == r.shape
        assert jnp.allclose(o, r, atol=2e-3, rtol=2e-3), float(jnp.max(jnp.abs(o - r)))

    # Mirror the decoder's use of the head outputs (shape checks only).
    hyper_in = jnp.stack(outs[:num_mask_tokens + 1], axis=1)    # (B, 5, D//8)
    iou_pred = outs[-1]                                         # (B, 4)
    assert hyper_in.shape == (batch, num_mask_tokens + 1, transformer_dim // 8)
    assert iou_pred.shape == (batch, num_mask_tokens)

    # Single-head sigmoid-output MLP for coverage of the other activation path.
    key, km, kx = jax.random.split(key, 3)
    sig_mlp = MLP(transformer_dim, 32, 16, num_layers=3, sigmoid_output=True, key=km)
    xs = jax.random.normal(kx, (batch, 8, transformer_dim), jnp.float32)
    o2 = jax.block_until_ready(sig_mlp(xs))
    r2 = sig_mlp.reference(xs)
    assert o2.shape == (batch, 8, 16)
    assert jnp.allclose(o2, r2, atol=2e-3, rtol=2e-3), float(jnp.max(jnp.abs(o2 - r2)))

    print("KERNEL_OK")
</pallas_src>

<mosaic_0001>
module attributes {stable_mosaic.version = 11 : i64} {
  func.func @_mlp_bank_kernel(%arg0: i32, %arg1: i32, %arg2: memref<1x2x32xbf16, #tpu.memory_space<vmem>>, %arg3: memref<1x32x128xbf16, #tpu.memory_space<vmem>>, %arg4: memref<1x1x128xf32, #tpu.memory_space<vmem>>, %arg5: memref<1x1x128x128xbf16, #tpu.memory_space<vmem>>, %arg6: memref<1x1x1x128xf32, #tpu.memory_space<vmem>>, %arg7: memref<1x128x128xbf16, #tpu.memory_space<vmem>>, %arg8: memref<1x1x128xf32, #tpu.memory_space<vmem>>, %arg9: memref<1x2x128xf32, #tpu.memory_space<vmem>>) attributes {dimension_semantics = [#tpu.dimension_semantics<parallel>, #tpu.dimension_semantics<parallel>], iteration_bounds = array<i64: 6, 1>, scalar_prefetch = 0 : i64, scratch_operands = 0 : i64, tpu.core_type = #tpu.core_type<tc>, window_params = [{transform_indices = @transform_0, window_bounds = array<i64: 1, 2, 32>}, {transform_indices = @transform_1, window_bounds = array<i64: 1, 32, 128>}, {transform_indices = @transform_2, window_bounds = array<i64: 1, 1, 128>}, {transform_indices = @transform_3, window_bounds = array<i64: 1, 1, 128, 128>}, {transform_indices = @transform_4, window_bounds = array<i64: 1, 1, 1, 128>}, {transform_indices = @transform_5, window_bounds = array<i64: 1, 128, 128>}, {transform_indices = @transform_6, window_bounds = array<i64: 1, 1, 128>}, {transform_indices = @transform_7, window_bounds = array<i64: 1, 2, 128>}]} {
    %c0 = arith.constant 0 : index
    %c0_0 = arith.constant 0 : index
    %c0_1 = arith.constant 0 : index
    %0 = vector.load %arg2[%c0, %c0_0, %c0_1] : memref<1x2x32xbf16, #tpu.memory_space<vmem>>, vector<1x2x32xbf16>
    %1 = vector.shape_cast %0 : vector<1x2x32xbf16> to vector<2x32xbf16>
    %c0_2 = arith.constant 0 : index
    %c0_3 = arith.constant 0 : index
    %c0_4 = arith.constant 0 : index
    %2 = vector.load %arg3[%c0_2, %c0_3, %c0_4] : memref<1x32x128xbf16, #tpu.memory_space<vmem>>, vector<1x32x128xbf16>
    %3 = vector.shape_cast %2 : vector<1x32x128xbf16> to vector<32x128xbf16>
    %cst = arith.constant dense<0.000000e+00> : vector<2x128xf32>
    %4 = tpu.matmul %1, %3, %cst {dimension_numbers = #tpu.dot_dimension_numbers<[1], [0], [0], [1], [0, 0, 1, 1], [], []>} : vector<2x32xbf16>, vector<32x128xbf16>, vector<2x128xf32> -> vector<2x128xf32>
    %c0_5 = arith.constant 0 : index
    %c0_6 = arith.constant 0 : index
    %c0_7 = arith.constant 0 : index
    %5 = vector.load %arg4[%c0_5, %c0_6, %c0_7] : memref<1x1x128xf32, #tpu.memory_space<vmem>>, vector<1x1x128xf32>
    %6 = vector.shape_cast %5 : vector<1x1x128xf32> to vector<1x128xf32>
    %7 = vector.broadcast %6 : vector<1x128xf32> to vector<2x128xf32>
    %8 = arith.addf %4, %7 : vector<2x128xf32>
    %cst_8 = arith.constant 0.000000e+00 : f32
    %9 = vector.broadcast %cst_8 : f32 to vector<2x128xf32>
    %10 = arith.maximumf %8, %9 : vector<2x128xf32>
    %11 = arith.truncf %10 : vector<2x128xf32> to vector<2x128xbf16>
    %c0_9 = arith.constant 0 : index
    %c0_10 = arith.constant 0 : index
    %c0_11 = arith.constant 0 : index
    %c0_12 = arith.constant 0 : index
    %12 = vector.load %arg5[%c0_9, %c0_10, %c0_11, %c0_12] : memref<1x1x128x128xbf16, #tpu.memory_space<vmem>>, vector<1x1x128x128xbf16>
    %13 = vector.shape_cast %12 : vector<1x1x128x128xbf16> to vector<128x128xbf16>
    %cst_13 = arith.constant dense<0.000000e+00> : vector<2x128xf32>
    %14 = tpu.matmul %11, %13, %cst_13 {dimension_numbers = #tpu.dot_dimension_numbers<[1], [0], [0], [1], [0, 0, 1, 1], [], []>} : vector<2x128xbf16>, vector<128x128xbf16>, vector<2x128xf32> -> vector<2x128xf32>
    %c0_14 = arith.constant 0 : index
    %c0_15 = arith.constant 0 : index
    %c0_16 = arith.constant 0 : index
    %c0_17 = arith.constant 0 : index
    %15 = vector.load %arg6[%c0_14, %c0_15, %c0_16, %c0_17] : memref<1x1x1x128xf32, #tpu.memory_space<vmem>>, vector<1x1x1x128xf32>
    %16 = vector.shape_cast %15 : vector<1x1x1x128xf32> to vector<1x128xf32>
    %17 = vector.broadcast %16 : vector<1x128xf32> to vector<2x128xf32>
    %18 = arith.addf %14, %17 : vector<2x128xf32>
    %cst_18 = arith.constant 0.000000e+00 : f32
    %19 = vector.broadcast %cst_18 : f32 to vector<2x128xf32>
    %20 = arith.maximumf %18, %19 : vector<2x128xf32>
    %21 = arith.truncf %20 : vector<2x128xf32> to vector<2x128xbf16>
    %c0_19 = arith.constant 0 : index
    %c0_20 = arith.constant 0 : index
    %c0_21 = arith.constant 0 : index
    %22 = vector.load %arg7[%c0_19, %c0_20, %c0_21] : memref<1x128x128xbf16, #tpu.memory_space<vmem>>, vector<1x128x128xbf16>
    %23 = vector.shape_cast %22 : vector<1x128x128xbf16> to vector<128x128xbf16>
    %cst_22 = arith.constant dense<0.000000e+00> : vector<2x128xf32>
    %24 = tpu.matmul %21, %23, %cst_22 {dimension_numbers = #tpu.dot_dimension_numbers<[1], [0], [0], [1], [0, 0, 1, 1], [], []>} : vector<2x128xbf16>, vector<128x128xbf16>, vector<2x128xf32> -> vector<2x128xf32>
    %c0_23 = arith.constant 0 : index
    %c0_24 = arith.constant 0 : index
    %c0_25 = arith.constant 0 : index
    %25 = vector.load %arg8[%c0_23, %c0_24, %c0_25] : memref<1x1x128xf32, #tpu.memory_space<vmem>>, vector<1x1x128xf32>
    %26 = vector.shape_cast %25 : vector<1x1x128xf32> to vector<1x128xf32>
    %27 = vector.broadcast %26 : vector<1x128xf32> to vector<2x128xf32>
    %28 = arith.addf %24, %27 : vector<2x128xf32>
    %c0_26 = arith.constant 0 : index
    %c0_27 = arith.constant 0 : index
    %c0_28 = arith.constant 0 : index
    %29 = vector.load %arg9[%c0_26, %c0_27, %c0_28] : memref<1x2x128xf32, #tpu.memory_space<vmem>>, vector<1x2x128xf32>
    %30 = vector.shape_cast %29 : vector<1x2x128xf32> to vector<2x128xf32>
    %31 = vector.shape_cast %28 : vector<2x128xf32> to vector<1x2x128xf32>
    tpu.vector_store %arg9[%c0_26, %c0_27, %c0_28], %31 {strides = array<i32>} : memref<1x2x128xf32, #tpu.memory_space<vmem>>, vector<1x2x128xf32>,
    return
  }
  func.func @transform_0(%arg0: i32, %arg1: i32) -> (i32, i32, i32) {
    %c0_i32 = arith.constant 0 : i32
    %c0_i32_0 = arith.constant 0 : i32
    return %arg0, %arg1, %c0_i32 : i32, i32, i32
  }
  func.func @transform_1(%arg0: i32, %arg1: i32) -> (i32, i32, i32) {
    %c0_i32 = arith.constant 0 : i32
    %c0_i32_0 = arith.constant 0 : i32
    %c0_i32_1 = arith.constant 0 : i32
    return %arg0, %c0_i32, %c0_i32_0 : i32, i32, i32
  }
  func.func @transform_2(%arg0: i32, %arg1: i32) -> (i32, i32, i32) {
    %c0_i32 = arith.constant 0 : i32
    %c0_i32_0 = arith.constant 0 : i32
    %c0_i32_1 = arith.constant 0 : i32
    return %arg0, %c0_i32, %c0_i32_0 : i32, i32, i32
  }
  func.func @transform_3(%arg0: i32, %arg1: i32) -> (i32, i32, i32, i32) {
    %c0_i32 = arith.constant 0 : i32
    %c0_i32_0 = arith.constant 0 : i32
    %c0_i32_1 = arith.constant 0 : i32
    %c0_i32_2 = arith.constant 0 : i32
    return %arg0, %c0_i32, %c0_i32_0, %c0_i32_1 : i32, i32, i32, i32
  }
  func.func @transform_4(%arg0: i32, %arg1: i32) -> (i32, i32, i32, i32) {
    %c0_i32 = arith.constant 0 : i32
    %c0_i32_0 = arith.constant 0 : i32
    %c0_i32_1 = arith.constant 0 : i32
    %c0_i32_2 = arith.constant 0 : i32
    return %arg0, %c0_i32, %c0_i32_0, %c0_i32_1 : i32, i32, i32, i32
  }
  func.func @transform_5(%arg0: i32, %arg1: i32) -> (i32, i32, i32) {
    %c0_i32 = arith.constant 0 : i32
    %c0_i32_0 = arith.constant 0 : i32
    %c0_i32_1 = arith.constant 0 : i32
    return %arg0, %c0_i32, %c0_i32_0 : i32, i32, i32
  }
  func.func @transform_6(%arg0: i32, %arg1: i32) -> (i32, i32, i32) {
    %c0_i32 = arith.constant 0 : i32
    %c0_i32_0 = arith.constant 0 : i32
    %c0_i32_1 = arith.constant 0 : i32
    return %arg0, %c0_i32, %c0_i32_0 : i32, i32, i32
  }
  func.func @transform_7(%arg0: i32, %arg1: i32) -> (i32, i32, i32) {
    %c0_i32 = arith.constant 0 : i32
    %c0_i32_0 = arith.constant 0 : i32
    return %arg0, %arg1, %c0_i32 : i32, i32, i32
  }
}

</mosaic_0001>

<bundles_post_ra>
// kernel: tpu_custom_call.1
= control target key start
LH: loop header
LB: loop body
LE: loop exit
PB: predicated region body
PF: predicated region fallthrough
CT: control target
= control target key end

     0   :  { %s1788_s0 = inlined_call_operand.hbm [shape: bf16[6,2,32], index: 0, kind: input, shape index: {}]   ;;  %s1789_s1 = inlined_call_operand.hbm [shape: bf16[6,32,128], index: 1, kind: input, shape index: {}]   ;;  %s1790_s2 = inlined_call_operand.vmem [shape: f32[6,1,128], index: 2, kind: input, shape index: {}]   ;;  %s1791_s3 = inlined_call_operand.hbm [shape: bf16[6,1,128,128], index: 3, kind: input, shape index: {}]   ;;  %s1792_s4 = inlined_call_operand.vmem [shape: f32[6,1,1,128], index: 4, kind: input, shape index: {}]   ;;  %s1793_s5 = inlined_call_operand.hbm [shape: bf16[6,128,128], index: 5, kind: input, shape index: {}]   ;;  %s1794_s6 = inlined_call_operand.vmem [shape: f32[6,1,128], index: 6, kind: input, shape index: {}]   ;;  %s1795_s7 = inlined_call_operand.hbm [shape: f32[6,2,128], index: 7, kind: output, shape index: {}]  }
   0x1   :  { %1805 = sst [smem:[#allocation19_spill]] %s1788_s0 }
   0x2   :  { %1806 = sst [smem:[#allocation20_spill]] %s1789_s1 }
   0x3   :  { %1807 = sst [smem:[#allocation21_spill]] %s1791_s3 }
   0x4   :  { %12 = vsyncpa [#allocation3], 0 }
   0x5   :  { %14 = vsyncpa [#allocation3 + $0x1], 0 }
   0x6   :  { %15 = vsyncpa [#allocation6], 0 }
   0x7   :  { %17 = vsyncpa [#allocation6 + $0x1], 0 }
   0x8   :  { %18 = vsyncpa [#allocation9], 0 }
   0x9   :  { %20 = vsyncpa [#allocation9 + $0x1], 0 }
   0xa   :  { %21 = vsyncpa [#allocation4], 0 }
   0xb   :  { %23 = vsyncpa [#allocation4 + $0x1], 0  ;;  %s1425_s24 = smov 0   ;;  %s1427_s25 = smov 0  }
   0xc   :  { %s1429_s26 = smov 0   ;;  %s1431_s27 = smov 0  }
   0xd   :  { %s1433_s28 = smov 0   ;;  %s1435_s29 = smov 0  }
   0xe LB: > { %1808 = sst [smem:[#allocation15_spill]] %s1362_s26  ;;  %s1456_s30 = sadd.s32 4294967295, %s1374_s29   ;;  %s1374_s29 = sphi %s1435_s29, %s29_s29   ;;  %s1370_s28 = sphi %s1433_s28, %s1835_s28   ;;  %s1366_s27 = sphi %s1431_s27, %s1834_s27   ;;  %s1362_s26 = sphi %s1429_s26, %s1830_s26   ;;  %s1358_s25 = sphi %s1427_s25, %s1833_s25   ;;  %s1354_s24 = sphi %s1425_s24, %s1832_s24  }
   0xf   : > { %s949_s8 = sadd.s32 4294967294, %s1374_s29   ;;  %s41_s9 = sadd.s32 1, %s1370_s28 }
  0x10   : > { %s50_s10 = sadd.s32 1, %s1362_s26  ;;  %p43_p0 = scmp.ge.s32.totalorder %s41_s9, 6 }
  0x11   : > { %p57_p1 = scmp.ne.s32.totalorder %s1362_s26, %s1358_s25  ;;  %p58_p2 = scmp.eq.s32.totalorder %s1374_s29, 0 }
  0x12   : > { %p63_p3 = scmp.ne.s32.totalorder %s1358_s25, %s1354_s24  ;;  %s1837_s9 = smov (%p43_p0, %s41_s9), 0 }
  0x13   : > { %1809 = sst [smem:[#allocation16_spill]] %s1837_s9  ;;  %p1468_p4 = por %p58_p2, %p57_p1 }
  0x14   : > { %p64_p5 = scmp.eq.s32.totalorder %s1456_s30, 0  ;;  %s45_s12 = ssub.s32 %s1370_s28, %s1837_s9 }
  0x15   : > { %p245_p6 = scmp.eq.s32.totalorder %s1456_s30, 5  ;;  %p48_p7 = scmp.eq.s32.totalorder %s45_s12, 0 }
  0x16   : > { %p1476_p8 = por %p64_p5, %p63_p3  ;;  %p251_p10 = scmp.eq.s32.totalorder %s949_s8, 5 }
  0x17   : > { %p1480_p9 = por %p245_p6, %p57_p1  ;;  %p1092_p12 = scmp.lt.s32.totalorder %s1374_s29, 6 }
  0x18   : > { %s1811_s13 = scalar_select %p1476_p8, 1, 0 }
  0x19   : > { %s1812_s14 = scalar_select %p1480_p9, 1, 0 }
  0x1a   : > { %s1485_s15 = scalar_select %p48_p7, %s1362_s26, %s50_s10  }
  0x1b   : > { %p1487_p11 = por %p251_p10, %p63_p3  ;;  %s1493_s17 = sand.u32 1, %s1362_s26  }
  0x1c   : > { %1813 = sst [smem:[#allocation17_spill]] %s1485_s15  ;;  %s289_s18 = sand.u32 1, %s1374_s29  }
  0x1d   : > { %s1814_s16 = scalar_select %p1487_p11, 1, 0 }
  0x1e   : > { %s953_s19 = sshll.u32 %s1493_s17, 4  ;;  %p1499_p13 = pnand %p1092_p12, %p1468_p4 }
  0x1f   : > { %1815 = sst [smem:[#allocation18_spill]] %s1814_s16  ;;  %s993_s21 = sshll.u32 %s1370_s28, 8 }
  0x20   : > { %s1817_s1 = sld [smem:[#allocation20_spill]]  ;;  %s293_s10 = scalar_lea.vmem [#allocation5], %s953_s19 }
  0x21   : > { %s300_s12 = sshll.u32 %s293_s10, 4  ;;  %s1511_s11 = scalar_lea.sflag [#allocation6], %s289_s18  ;;  %s1509_s12 = int_to_ptr.vmem [resolvable:$true] %s300_s12 }
  0x22   : > { %p1517_p1 = pneg %p1499_p13 }
  0x26   : > { %s1507_s8 = scalar_lea.hbm %s1817_s1, %s993_s21  ;;  %s1169_s19 = scalar_lea.hbm %s1817_s1, 1536 }
  0x27   : > { %s1164_s9 = scalar_lea.hbm %s1507_s8, 256  ;;  %p1170_p4 = scmp.lt.u32.totalorder %s1507_s8, %s1817_s1 }
  0x28   : > { %p1165_p0 = scmp.ne.s32.totalorder %s1507_s8, %s1164_s9  ;;  %p1171_p5 = scmp.lt.u32.totalorder %s1169_s19, %s1164_s9 }
  0x29   : > { %p1173_p7 = scmp.lt.u32.totalorder %s1164_s9, %s1507_s8 }
  0x2a   : > { %p1167_p2 = pnand %p1517_p1, %p1165_p0  ;;  %p1172_p6 = por %p1171_p5, %p1170_p4 }
  0x2c   : > { %p1168_p3 = pneg %p1167_p2  ;;  %p1174_p10 = por %p1173_p7, %p1172_p6 }
  0x2e   : > { %p1175_p12 = pnand %p1174_p10, %p1168_p3 }
  0x30   : > { %1178 = shalt.err (!%p1175_p12)
}
  0x31   : > { %s1179_s18 = scalar_lea.vmem %s1509_s12, 256  ;;  %s1376_s21 = smov [#allocation5]  }
  0x32   : > { %p1180_p0 = scmp.ne.s32.totalorder %s1509_s12, %s1179_s18  ;;  %s1184_s22 = sshll.u32 %s1376_s21, 4  ;;  %s1185_s22 = int_to_ptr.vmem [resolvable:$false] %s1184_s22 }
  0x33   : > { %s1186_s23 = scalar_lea.vmem %s1185_s22, 512  ;;  %p1187_p9 = scmp.lt.s32.totalorder %s1509_s12, %s1185_s22 }
  0x34   : > { %p1182_p2 = pnand %p1180_p0, %p1517_p1  ;;  %p1188_p8 = scmp.lt.s32.totalorder %s1186_s23, %s1179_s18 }
  0x36   : > { %p1183_p11 = pneg %p1182_p2  ;;  %p1189_p4 = por %p1188_p8, %p1187_p9 }
  0x38   : > { %p1190_p5 = pnand %p1189_p4, %p1183_p11 }
  0x3a   : > { %1193 = shalt.err (!%p1190_p5)
}
  0x3b   : > { %s1800_s9 = smov 64   ;;  %s1802_s19 = smov 4  }
  0x3c   : > { %1081 = dma.hbm_to_vmem [thread:$0]  (!%p1499_p13), %s1507_s8, 256, %s1509_s12, %s1511_s11, %s1800_s9, %s1800_s9, %s1802_s19  }
  0x3d   : > { %p962_p8 = scmp.ge.s32.totalorder %s1374_s29, 1  ;;  %p368_p9 = scmp.lt.s32.totalorder %s1374_s29, 7 }
  0x3e   : > { %s952_s18 = sshll.u32 %s1370_s28, 4  ;;  %s1820_s0 = sld [smem:[#allocation19_spill]] }
  0x3f   : > { %p1546_p11 = pnand %p962_p8, %p368_p9  ;;  %s274_s1 = scalar_lea.vmem [#allocation2], %s1493_s17 }
  0x40   : > { %s282_s26 = sshll.u32 %s274_s1, 4  ;;  %s956_s8 = sshll.u32 %s1493_s17, 6  ;;  %s1557_s26 = int_to_ptr.vmem [resolvable:$true] %s282_s26 }
  0x41   : > { %s1819_s10 = scalar_select %p1546_p11, 1, 0 }
  0x42   : > { %s272_s12 = scalar_lea.sflag [#allocation3], %s1493_s17 }
  0x44   : > { %s1554_s23 = scalar_lea.hbm %s1820_s0, %s952_s18  ;;  %s1199_s18 = scalar_lea.hbm %s1820_s0, 96 }
  0x45   : > { %s1194_s9 = scalar_lea.hbm %s1554_s23, 16  ;;  %p1200_p10 = scmp.lt.u32.totalorder %s1554_s23, %s1820_s0 }
  0x46   : > { %p1195_p3 = scmp.ne.s32.totalorder %s1554_s23, %s1194_s9  ;;  %p1201_p12 = scmp.lt.u32.totalorder %s1199_s18, %s1194_s9 }
  0x47   : > { %p1203_p2 = scmp.lt.u32.totalorder %s1194_s9, %s1554_s23 }
  0x48   : > { %p1197_p6 = pnand %p1195_p3, %p1517_p1  ;;  %p1202_p0 = por %p1201_p12, %p1200_p10 }
  0x4a   : > { %p1198_p7 = pneg %p1197_p6  ;;  %p1204_p4 = por %p1203_p2, %p1202_p0 }
  0x4c   : > { %p1205_p5 = pnand %p1204_p4, %p1198_p7 }
  0x4e   : > { %1208 = shalt.err (!%p1205_p5)
}
  0x4f   : > { %s1209_s1 = scalar_lea.vmem %s1557_s26, 16  ;;  %s1379_s16 = smov [#allocation2]  }
  0x50   : > { %p1210_p8 = scmp.ne.s32.totalorder %s1557_s26, %s1209_s1  ;;  %s1214_s19 = sshll.u32 %s1379_s16, 4  ;;  %s1215_s19 = int_to_ptr.vmem [resolvable:$false] %s1214_s19 }
  0x51   : > { %s1216_s21 = scalar_lea.vmem %s1215_s19, 32  ;;  %p1217_p6 = scmp.lt.s32.totalorder %s1557_s26, %s1215_s19 }
  0x52   : > { %p1212_p9 = pnand %p1210_p8, %p1517_p1  ;;  %p1218_p11 = scmp.lt.s32.totalorder %s1216_s21, %s1209_s1 }
  0x54   : > { %p1213_p3 = pneg %p1212_p9  ;;  %p1219_p10 = por %p1218_p11, %p1217_p6 }
  0x56   : > { %p1220_p12 = pnand %p1219_p10, %p1213_p3 }
  0x58   : > { %1223 = shalt.err (!%p1220_p12)
}
  0x59   : > { %1078 = dma.hbm_to_vmem [thread:$0]  (!%p1499_p13), %s1554_s23, 16, %s1557_s26, %s272_s12  }
  0x5a   : > { %s994_s9 = sshll.u32 %s1370_s28, 10  ;;  %s1821_s3 = sld [smem:[#allocation21_spill]] }
  0x5b   : > { %s320_s1 = scalar_lea.vmem [#allocation7], %s956_s8 }
  0x5c   : > { %s327_s19 = sshll.u32 %s320_s1, 4  ;;  %s1592_s19 = int_to_ptr.vmem [resolvable:$true] %s327_s19 }
  0x60   : > { %s1588_s16 = scalar_lea.hbm %s1821_s3, %s994_s9  ;;  %s1229_s12 = scalar_lea.hbm %s1821_s3, 6144 }
  0x61   : > { %s1224_s21 = scalar_lea.hbm %s1588_s16, 1024  ;;  %p1230_p2 = scmp.lt.u32.totalorder %s1588_s16, %s1821_s3 }
  0x62   : > { %p1225_p11 = scmp.ne.s32.totalorder %s1588_s16, %s1224_s21  ;;  %p1231_p4 = scmp.lt.u32.totalorder %s1229_s12, %s1224_s21 }
  0x63   : > { %p1233_p8 = scmp.lt.u32.totalorder %s1224_s21, %s1588_s16 }
  0x64   : > { %p1227_p7 = pnand %p1225_p11, %p1517_p1  ;;  %p1232_p5 = por %p1231_p4, %p1230_p2 }
  0x66   : > { %p1228_p0 = pneg %p1227_p7  ;;  %p1234_p9 = por %p1233_p8, %p1232_p5 }
  0x68   : > { %p1235_p3 = pnand %p1234_p9, %p1228_p0 }
  0x6a   : > { %1238 = shalt.err (!%p1235_p3)
}
  0x6b   : > { %s1239_s1 = scalar_lea.vmem %s1592_s19, 1024  ;;  %s1380_s26 = smov [#allocation7]  }
  0x6c   : > { %p1240_p6 = scmp.ne.s32.totalorder %s1592_s19, %s1239_s1  ;;  %s1244_s23 = sshll.u32 %s1380_s26, 4  ;;  %s1245_s23 = int_to_ptr.vmem [resolvable:$false] %s1244_s23 }
  0x6d   : > { %s1246_s18 = scalar_lea.vmem %s1245_s23, 2048  ;;  %p1247_p11 = scmp.lt.s32.totalorder %s1592_s19, %s1245_s23 }
  0x6e   : > { %p1242_p10 = pnand %p1240_p6, %p1517_p1  ;;  %p1248_p7 = scmp.lt.s32.totalorder %s1246_s18, %s1239_s1 }
  0x70   : > { %p1243_p12 = pneg %p1242_p10  ;;  %p1249_p2 = por %p1248_p7, %p1247_p11 }
  0x72   : > { %p1250_p4 = pnand %p1249_p2, %p1243_p12 }
  0x74   : > { %1253 = shalt.err (!%p1250_p4)
}
  0x75   : > { %s1822_s21 = smov 4   ;;  %s1823_s12 = smov 64  }
  0x76   : > { %1084 = dma.hbm_to_vmem [thread:$0]  (!%p1499_p13), %s1588_s16, 1024, %s1592_s19, %s1511_s11, %s1823_s12, %s1823_s12, %s1822_s21  }
  0x77   : > { %s1624_s1 = scalar_lea.hbm %s1793_s5, %s994_s9  ;;  %s347_s23 = scalar_lea.vmem [#allocation8], %s956_s8 }
  0x78   : > { %s354_s18 = sshll.u32 %s347_s23, 4  ;;  %s344_s0 = scalar_lea.sflag [#allocation9], %s1493_s17  ;;  %s1628_s18 = int_to_ptr.vmem [resolvable:$true] %s354_s18 }
  0x79   : > { %s1254_s3 = scalar_lea.hbm %s1624_s1, 1024  ;;  %s1259_s9 = scalar_lea.hbm %s1793_s5, 6144 }
  0x7a   : > { %p1255_p0 = scmp.ne.s32.totalorder %s1624_s1, %s1254_s3  ;;  %p1260_p9 = scmp.lt.u32.totalorder %s1624_s1, %s1793_s5 }
  0x7b   : > { %p1261_p3 = scmp.lt.u32.totalorder %s1259_s9, %s1254_s3  ;;  %p1263_p10 = scmp.lt.u32.totalorder %s1254_s3, %s1624_s1 }
  0x7c   : > { %p1257_p5 = pnand %p1255_p0, %p1517_p1 }
  0x7d   : > { %p1262_p6 = por %p1261_p3, %p1260_p9 }
  0x7e   : > { %p1258_p8 = pneg %p1257_p5 }
  0x7f   : > { %p1264_p12 = por %p1263_p10, %p1262_p6 }
  0x81   : > { %p1265_p11 = pnand %p1264_p12, %p1258_p8 }
  0x83   : > { %1268 = shalt.err (!%p1265_p11)
}
  0x84   : > { %s1269_s8 = scalar_lea.vmem %s1628_s18, 1024  ;;  %s1381_s26 = smov [#allocation8]  }
  0x85   : > { %p1270_p7 = scmp.ne.s32.totalorder %s1628_s18, %s1269_s8  ;;  %s1274_s23 = sshll.u32 %s1381_s26, 4  ;;  %s1275_s23 = int_to_ptr.vmem [resolvable:$false] %s1274_s23 }
  0x86   : > { %s1276_s11 = scalar_lea.vmem %s1275_s23, 2048  ;;  %p1277_p0 = scmp.lt.s32.totalorder %s1628_s18, %s1275_s23 }
  0x87   : > { %p1272_p2 = pnand %p1270_p7, %p1517_p1  ;;  %p1278_p5 = scmp.lt.s32.totalorder %s1276_s11, %s1269_s8 }
  0x89   : > { %p1273_p4 = pneg %p1272_p2  ;;  %p1279_p9 = por %p1278_p5, %p1277_p0 }
  0x8b   : > { %p1280_p3 = pnand %p1279_p9, %p1273_p4 }
  0x8d   : > { %1283 = shalt.err (!%p1280_p3)
}
  0x8e   : > { %1087 = dma.hbm_to_vmem [thread:$0]  (!%p1499_p13), %s1624_s1, 1024, %s1628_s18, %s344_s0, %s1823_s12, %s1823_s12, %s1822_s21  }
  0x8f   : > { %p1824_p1 = scmp.ne.s32.totalorder %s1819_s10, 0 }
  0x90   : > { %s1660_s3 = sand.u32 (!%p1824_p1), 1, %s1358_s25   ;;  %p1825_p8 = scmp.ne.s32.totalorder (!%p1824_p1), %s1811_s13, 0 }
  0x91   : > { %372 = sbr.rel (%p1824_p1) target bundleno = 833 (0x341), region = 48  ;;  %s375_s15 = scalar_lea.sflag (!%p1824_p1), [#allocation3], %s1660_s3 }
  0x92   : > { %s377_s16 = scalar_lea.vmem (!%p1824_p1), [#allocation2], %s1660_s3 }
  0x98   : > { %1337 = dma.done.wait (%p1825_p8), %s375_s15, 16  }
  0x99   : > { %1339 = vsyncadd (%p1825_p8), %s375_s15, 4294967280  ;;  %s382_s0 = sand.u32 1, %s1456_s30   ;;  %s963_s17 = sshll.u32 %s1660_s3, 4 }
  0x9a   : > { %s383_s20 = scalar_lea.sflag [#allocation6], %s382_s0  ;;  %s386_s10 = scalar_lea.vmem [#allocation5], %s963_s17 }
  0x9b   : > { %1341 = dma.done.wait (%p1825_p8), %s383_s20, 1280  }
  0x9c   : > { %1343 = vsyncadd (%p1825_p8), %s383_s20, 4294966016  ;;  %s964_s21 = sshll.u32 %s1660_s3, 6  ;;  %s401_s1 = scalar_lea.sflag [#allocation9], %s1660_s3 }
  0x9d   : > { %s1675_s12 = scalar_lea.vmem [#allocation7], %s964_s21  ;;  %s1678_s18 = scalar_lea.vmem [#allocation8], %s964_s21 }
  0x9e   : > { %1345 = dma.done.wait (%p1825_p8), %s401_s1, 1024  }
  0x9f   : > { %1347 = vsyncadd (%p1825_p8), %s401_s1, 4294966272  ;;  %v1382_v0 = vmov 0.0   ;;  %vm1383_vm0 = vmmov 0   ;;  %v1146_v1 = vld [vmem:[%s386_s10] sm:$0xff]   ;;  %v1147_v2 = vld [vmem:[%s386_s10 + $0x8] sm:$0xff]   ;;  %vm492_vm1 = vcmask 261120  }
  0xa0   : > { %1017 = vmatprep.subr.bf16.mxu0 %v1382_v0  ;;  %1021 = vmatprep.mubr.msk.bf16.mxu0 %vm1383_vm0, %v1382_v0  ;;  %v1148_v3 = vld [vmem:[%s1675_s12] sm:$0xff]   ;;  %v1149_v4 = vld [vmem:[%s1675_s12 + $0x8] sm:$0xff]   ;;  %v468_v5 = vld [vmem:[%s377_s16] sm:$0x1]  ;;  %p458_p13 = scmp.lt.s32.totalorder %s1366_s27, 5  ;;  %s966_s23 = sshll.u32 %s1660_s3, 1 }
  0xa1   : > { %1025 = vmatprep.subr.bf16.mxu1 %v1382_v0  ;;  %1041 = vmatprep.mubr.msk.bf16.mxu1 %vm1383_vm0, %v1382_v0  ;;  %v1150_v6 = vld [vmem:[%s1675_s12 + $0x10] sm:$0xff]   ;;  %v1151_v7 = vld [vmem:[%s1675_s12 + $0x18] sm:$0xff]   ;;  %v1152_v8 = vld [vmem:[%s1675_s12 + $0x20] sm:$0xff]   ;;  %s990_s0 = sshll.u32 %s1366_s27, 5  ;;  %s457_s17 = scalar_lea.vmem [#allocation10], %s966_s23 }
  0xa2   : > { %1018 = vmatpush3.bf16.msra.mxu0 %v1146_v1  ;;  %1026 = vmatpush3.bf16.msra.mxu1 %v1148_v3  ;;  %v1153_v9 = vld [vmem:[%s1675_s12 + $0x28] sm:$0xff]   ;;  %v1154_v10 = vld [vmem:[%s1675_s12 + $0x30] sm:$0xff]   ;;  %v1155_v11 = vld [vmem:[%s1675_s12 + $0x38] sm:$0xff]   ;;  %s459_s30 = scalar_select %p458_p13, %s1366_s27, 5 }
  0xa3   : > { %1019 = vmatprep.subr.bf16.mxu0 %v1382_v0  ;;  %1027 = vmatprep.subr.bf16.mxu1 %v1382_v0  ;;  %v1156_v12 = vld [vmem:[%s1678_s18] sm:$0xff]   ;;  %v1157_v13 = vld [vmem:[%s1678_s18 + $0x8] sm:$0xff]   ;;  %v1158_v14 = vld [vmem:[%s1678_s18 + $0x10] sm:$0xff]   ;;  %s778_s20 = sshll.u32 %s457_s17, 4  ;;  %s1740_s12 = scalar_lea.hbm %s1795_s7, %s990_s0  ;;  %s1742_s20 = int_to_ptr.vmem [resolvable:$true] %s778_s20 }
  0xa4   : > { %v1159_v15 = vld [vmem:[%s1678_s18 + $0x18] sm:$0xff]   ;;  %v1160_v16 = vld [vmem:[%s1678_s18 + $0x20] sm:$0xff]   ;;  %v1161_v17 = vld [vmem:[%s1678_s18 + $0x28] sm:$0xff]   ;;  %s460_s19 = scalar_lea.vmem %s1790_s2, %s459_s30  ;;  %s463_s26 = scalar_lea.vmem %s1792_s4, %s459_s30 }
  0xa5   : > { %v967_v18 = vld [vmem:[%s460_s19] ss:$0 sm:$0xff]  ;;  %v1162_v26 = vld [vmem:[%s1678_s18 + $0x30] sm:$0xff]   ;;  %s466_s16 = scalar_lea.vmem %s1794_s6, %s459_s30  ;;  %s764_s1 = scalar_lea.sflag [#allocation4], %s1660_s3 }
  0xa6   : > { %1020 = vmatpush3.bf16.msra.mxu0 %v1147_v2  ;;  %1028 = vmatpush3.bf16.msra.mxu1 %v1149_v4  ;;  %v1163_v27 = vld [vmem:[%s1678_s18 + $0x38] sm:$0xff]   ;;  %s1284_s27 = scalar_lea.vmem %s1742_s20, 32  ;;  %p1826_p10 = scmp.ne.s32.totalorder %s1812_s14, 0 }
  0xa7   : > { %1045 = vmatprep.subr.bf16.mxu0 %v1382_v0  ;;  %1029 = vmatprep.subr.bf16.mxu1 %v1382_v0  ;;  %v971_v28 = vld [vmem:[%s463_s26] ss:$0 sm:$0xff]  ;;  %p1285_p6 = scmp.ne.s32.totalorder %s1742_s20, %s1284_s27  ;;  %s1384_s18 = smov [#allocation10]  }
  0xa8   : > { %v980_v36 = vld [vmem:[%s466_s16] ss:$0 sm:$0xff]  ;;  %s1288_s30 = sshll.u32 %s1384_s18, 4  ;;  %s1289_s30 = int_to_ptr.vmem [resolvable:$false] %s1288_s30 }
  0xa9   : > { %1022 = vmatmul.mubr.msk.bf16.vlgmr.msra.gmra.mrb[0].mxu0 %vm492_vm1, %v468_v5  ;;  %p1286_p12 = pnand %p1285_p6, %p1826_p10  ;;  %s1290_s13 = scalar_lea.vmem %s1289_s30, 64 }
  0xaa   : > { %1061 = vmatprep.mubr.msk.bf16.mxu0 %vm1383_vm0, %v1382_v0  ;;  %1030 = vmatpush3.bf16.msra.mxu1 %v1150_v6  ;;  %p1291_p7 = scmp.lt.s32.totalorder %s1742_s20, %s1289_s30  ;;  %p1292_p2 = scmp.lt.s32.totalorder %s1290_s13, %s1284_s27 }
  0xab   : > { %1031 = vmatprep.subr.bf16.mxu1 %v1382_v0  ;;  %1046 = vmatpush3.bf16.msra.mxu0 %v1156_v12  ;;  %p1287_p11 = pneg %p1286_p12 }
  0xac   : > { %1047 = vmatprep.subr.bf16.mxu0 %v1382_v0  ;;  %p1293_p4 = por %p1292_p2, %p1291_p7 }
  0xae   : > { %1032 = vmatpush3.bf16.msra.mxu1 %v1151_v7  ;;  %p1294_p0 = pnand %p1293_p4, %p1287_p11 }
  0xaf   : > { %1033 = vmatprep.subr.bf16.mxu1 %v1382_v0  ;;  %1048 = vmatpush3.bf16.msra.mxu0 %v1157_v13 }
  0xb0   : > { %1049 = vmatprep.subr.bf16.mxu0 %v1382_v0 }
  0xb2   : > { %1034 = vmatpush3.bf16.msra.mxu1 %v1152_v8 }
  0xb3   : > { %1035 = vmatprep.subr.bf16.mxu1 %v1382_v0  ;;  %1050 = vmatpush3.bf16.msra.mxu0 %v1158_v14 }
  0xb4   : > { %1051 = vmatprep.subr.bf16.mxu0 %v1382_v0 }
  0xb6   : > { %1036 = vmatpush3.bf16.msra.mxu1 %v1153_v9 }
  0xb7   : > { %1037 = vmatprep.subr.bf16.mxu1 %v1382_v0  ;;  %1052 = vmatpush3.bf16.msra.mxu0 %v1159_v15 }
  0xb8   : > { %1053 = vmatprep.subr.bf16.mxu0 %v1382_v0 }
  0xba   : > { %1038 = vmatpush3.bf16.msra.mxu1 %v1154_v10 }
  0xbb   : > { %1039 = vmatprep.subr.bf16.mxu1 %v1382_v0  ;;  %1054 = vmatpush3.bf16.msra.mxu0 %v1160_v16 }
  0xbc   : > { %1055 = vmatprep.subr.bf16.mxu0 %v1382_v0 }
  0xbe   : > { %1040 = vmatpush3.bf16.msra.mxu1 %v1155_v11 }
  0xbf   : > { %1056 = vmatpush3.bf16.msra.mxu0 %v1161_v17 }
  0xc0   : > { %1057 = vmatprep.subr.bf16.mxu0 %v1382_v0 }
  0xc3   : > { %1058 = vmatpush3.bf16.msra.mxu0 %v1162_v26 }
  0xc4   : > { %1059 = vmatprep.subr.bf16.mxu0 %v1382_v0 }
  0xc7   : > { %1060 = vmatpush3.bf16.msra.mxu0 %v1163_v27 }
 0x17c   : > { %v530_v19 = vpop.f32.mrb[0].mxu0 }
 0x17d   : > { %v531_v20 = vadd.f32 %v967_v18, %v530_v19  ;;  %v1023_v21 = vpop.f32.mrb[1].mxu0 }
 0x17e   : > { %v533_v22 = vpop.f32.mrb[2].mxu0 }
 0x17f   : > { %v536_v23 = vmax.f32 %v531_v20, 0.0  ;;  %v1024_v24 = vpop.f32.mrb[3].mxu0 }
 0x181   : > { %v537_v25 = vpack.c.bf16 %v536_v23, %v536_v23 }
 0x183   : > { %1042 = vmatmul.mubr.bf16.vlgmr.msra.gmra.mrb[0].mxu1 %v537_v25 }
 0x256   : > { %v643_v29 = vpop.f32.mrb[0].mxu1 }
 0x257   : > { %v644_v30 = vadd.f32 %v971_v28, %v643_v29  ;;  %v1043_v31 = vpop.f32.mrb[1].mxu1 }
 0x258   : > { %v646_v32 = vpop.f32.mrb[2].mxu1 }
 0x259   : > { %v649_v33 = vmax.f32 %v644_v30, 0.0  ;;  %v1044_v34 = vpop.f32.mrb[3].mxu1 }
 0x25b   : > { %v650_v35 = vpack.c.bf16 %v649_v33, %v649_v33 }
 0x25d   : > { %1062 = vmatmul.mubr.bf16.vlgmr.msra.gmra.mrb[4].mxu0 %v650_v35 }
 0x330   : > { %v756_v37 = vpop.f32.mrb[4].mxu0 }
 0x331   : > { %v757_v38 = vadd.f32 %v980_v36, %v756_v37  ;;  %v1063_v39 = vpop.f32.mrb[5].mxu0 }
 0x332   : > { %v759_v40 = vpop.f32.mrb[6].mxu0 }
 0x333   : > { %762 = vst [vmem:[%s457_s17] sm:$0x3] %v757_v38  ;;  %v1064_v41 = vpop.f32.mrb[7].mxu0 }
 0x334   : > { %1297 = shalt.err (!%p1294_p0)
}
 0x335   : > { %s1298_s3 = scalar_lea.hbm %s1740_s12, 32  ;;  %s1302_s22 = scalar_lea.hbm %s1795_s7, 192 }
 0x336   : > { %p1299_p5 = scmp.ne.s32.totalorder %s1740_s12, %s1298_s3  ;;  %p1303_p1 = scmp.lt.u32.totalorder %s1740_s12, %s1795_s7 }
 0x337   : > { %p1304_p8 = scmp.lt.u32.totalorder %s1302_s22, %s1298_s3  ;;  %p1306_p6 = scmp.lt.u32.totalorder %s1298_s3, %s1740_s12 }
 0x338   : > { %p1300_p9 = pnand %p1299_p5, %p1826_p10 }
 0x339   : > { %p1305_p13 = por %p1304_p8, %p1303_p1 }
 0x33a   : > { %p1301_p3 = pneg %p1300_p9 }
 0x33b   : > { %p1307_p12 = por %p1306_p6, %p1305_p13 }
 0x33d   : > { %p1308_p11 = pnand %p1307_p12, %p1301_p3 }
 0x33f   : > { %1311 = shalt.err (!%p1308_p11)
}
 0x340   : > { %1073 = dma.vmem_to_hbm [thread:$0]  (%p1826_p10), %s1742_s20, 32, %s1740_s12, %s764_s1  }
 0x341 PF: > { %s1827_s23 = sld [smem:[#allocation18_spill]]  ;;  %p1093_p7 = scmp.ge.s32.totalorder %s1374_s29, 2 }
 0x342   : > { %s790_s11 = sand.u32 1, %s1354_s24  }
 0x343   : > { %s791_s15 = scalar_lea.sflag [#allocation4], %s790_s11 }
 0x347   : > { %p1828_p2 = scmp.ne.s32.totalorder %s1827_s23, 0 }
 0x349   : > { %p1089_p4 = pnand %p1093_p7, %p1828_p2 }
 0x34b   : > { %1349 = dma.done.wait (!%p1089_p4), %s791_s15, 32  }
 0x34c   : > { %1351 = vsyncadd (!%p1089_p4), %s791_s15, 4294967264  ;;  %s29_s29 = sadd.s32 1, %s1374_s29   ;;  %s1829_s16 = sld [smem:[#allocation15_spill]] }
 0x34d   : > { %p26_p0 = scmp.ge.s32.totalorder %s29_s29, 8   ;;  %s1830_s26 = sld [smem:[#allocation17_spill]] }
 0x34e   : > { %s1831_s14 = sld [smem:[#allocation16_spill]]  ;;  %s1832_s24 = smov %s1358_s25 }
 0x34f   : > { %s1834_s27 = smov %s1370_s28  ;;  %28 = sbr.rel (!%p26_p0) target bundleno = 14 (0xe), region = 139 }
 0x352   : > { %s1833_s25 = smov %s1829_s16 }
 0x354   : > { %s1835_s28 = smov %s1831_s14 }
 0x356   :  { %796 = vsyncpa [#allocation3], 1 }
 0x357   :  { %798 = vsyncpa [#allocation3 + $0x1], 1 }
 0x358   :  { %799 = vsyncpa [#allocation6], 1 }
 0x359   :  { %801 = vsyncpa [#allocation6 + $0x1], 1 }
 0x35a   :  { %802 = vsyncpa [#allocation9], 1 }
 0x35b   :  { %804 = vsyncpa [#allocation9 + $0x1], 1 }
 0x35c   :  { %805 = vsyncpa [#allocation4], 1 }
 0x35d   :  { %807 = vsyncpa [#allocation4 + $0x1], 1 }

</bundles_post_ra>
